<compile_context>
chip_gen: v6e
topology: v6e:2x2x1
jax: 0.10.0
libtpu: 0.0.40
codegen_flags: <defaults>
</compile_context>

<pallas_src>
import functools

import jax
import jax.numpy as jnp
from jax.experimental import pallas as pl
from jax.experimental.pallas import tpu as pltpu


def _round_up(n: int, m: int) -> int:
    return (n + m - 1) // m * m


def _vmem_capacity_bytes() -> int:
    """Generation-aware VMEM capacity (128 MiB on v5e/v6e, 64 MiB per TC on v7x)."""
    try:
        return int(pltpu.get_tpu_info().vmem_capacity_bytes)
    except Exception:
        return 64 * 1024 * 1024  # conservative default (v7x per-TensorCore)


# --------------------------------------------------------------------------- #
# Fused 3-layer MLP kernel: weights VMEM-resident, batch tiles streamed.       #
# --------------------------------------------------------------------------- #
def _mlp_kernel(x_ref, w1_ref, b1_ref, w2_ref, b2_ref, w3_ref, b3_ref, o_ref):
    """(Linear + ReLU) x2 -> Linear on one (tm, in_dim) batch tile.

    bf16 MXU operands with f32 accumulation; bf16 intermediate activations
    (intentional accuracy trade, validated against the f32 reference below).
    """
    x = x_ref[...].astype(jnp.bfloat16)  # f32 from HBM -> bf16 in-kernel (no wrapper pass)

    h = jnp.dot(x, w1_ref[...], preferred_element_type=jnp.float32) + b1_ref[...]
    h = jnp.maximum(h, 0.0).astype(jnp.bfloat16)

    h = jnp.dot(h, w2_ref[...], preferred_element_type=jnp.float32) + b2_ref[...]
    h = jnp.maximum(h, 0.0).astype(jnp.bfloat16)

    y = jnp.dot(h, w3_ref[...], preferred_element_type=jnp.float32) + b3_ref[...]
    o_ref[...] = y.astype(o_ref.dtype)


# --------------------------------------------------------------------------- #
# Fallback (v7x / huge hidden_dim): one Linear layer as a tiled matmul with    #
# an f32 VMEM accumulator and K-reduction on the last ("arbitrary") grid axis. #
# --------------------------------------------------------------------------- #
def _linear_layer_kernel(x_ref, w_ref, b_ref, o_ref, acc_ref, *, relu):
    k = pl.program_id(2)

    @pl.when(k == 0)
    def _init():
        acc_ref[...] = jnp.zeros_like(acc_ref)

    acc_ref[...] += jnp.dot(x_ref[...].astype(jnp.bfloat16), w_ref[...],
                            preferred_element_type=jnp.float32)

    @pl.when(k == pl.num_programs(2) - 1)
    def _finalize():
        y = acc_ref[...] + b_ref[...]
        if relu:
            y = jnp.maximum(y, 0.0)
        o_ref[...] = y.astype(o_ref.dtype)


def _tiled_linear(x, w, b, *, relu, out_dtype, tm=512, tn=512, tk=512):
    """y = [relu](x @ w + b), tiled over (M, N, K).  Used only when the fused path's
    resident weights would overflow VMEM (e.g. large hidden_dim on v7x's 64 MiB)."""
    M, K = x.shape
    Kw, N = w.shape
    assert K == Kw, (K, Kw)

    tm = max(8, min(_round_up(M, 8), tm))          # partial last M block is fine

    if N <= 128:
        tn = N                                     # block == full dim (lane rule ok)
    else:
        tn = min(tn, _round_up(N, 128))
        tn -= tn % 128                             # lane-dense multiple of 128

    if K <= tk:
        tk = K                                     # single K step, block == full dim
    else:
        for cand in (tk, 256, 128):
            if K % cand == 0:
                tk = cand
                break
        else:
            # Zero-pad K so a partial K block never mixes garbage into the acc.
            tk = 256
            kp = _round_up(K, tk)
            x = jnp.pad(x, ((0, 0), (0, kp - K)))
            w = jnp.pad(w, ((0, kp - K), (0, 0)))
            K = kp

    grid = (pl.cdiv(M, tm), pl.cdiv(N, tn), K // tk)

    return pl.pallas_call(
        functools.partial(_linear_layer_kernel, relu=relu),
        out_shape=jax.ShapeDtypeStruct((M, N), out_dtype),
        grid=grid,
        in_specs=[pl.BlockSpec((tm, tk), lambda i, j, k: (i, k)),
                  pl.BlockSpec((tk, tn), lambda i, j, k: (k, j)),
                  pl.BlockSpec((1, tn), lambda i, j, k: (0, j))],
        out_specs=pl.BlockSpec((tm, tn), lambda i, j, k: (i, j)),
        scratch_shapes=[pltpu.VMEM((tm, tn), jnp.float32)],
        compiler_params=pltpu.CompilerParams(
            dimension_semantics=("parallel", "parallel", "arbitrary")),
    )(x, w, b)


# --------------------------------------------------------------------------- #
# Param packing (ONCE, at init — not per forward)                              #
# --------------------------------------------------------------------------- #
def prepare_params(params):
    """Pack raw f32 params once.  Weights are stored (in, out) = PyTorch weight.T.

    Only the hidden dim is zero-padded (to a multiple of 128) so intermediates are
    lane-dense and MXU columns aren't wasted; zero pad columns stay zero through
    bias-add(0) + ReLU, so nothing leaks.  Input/output dims stay un-padded so the
    per-call wrapper does zero data movement.
    NOTE: on v6e/v7x (2x256x256 MXU) padding the hidden dim to a multiple of 256
    can raise MXU utilization when compute-bound; 128 kept as bandwidth-friendly
    default.
    """
    w1, w2, w3 = params["w1"], params["w2"], params["w3"]
    b1, b2, b3 = params["b1"], params["b2"], params["b3"]
    in_dim, hid = w1.shape
    out_dim = w3.shape[1]
    hid_p = _round_up(hid, 128)

    def pad_w(w, rows, cols):
        w = w.astype(jnp.bfloat16)
        return jnp.pad(w, ((0, rows - w.shape[0]), (0, cols - w.shape[1])))

    def pad_b(b, cols):
        b = jnp.asarray(b, jnp.float32).reshape(1, -1)
        return jnp.pad(b, ((0, 0), (0, cols - b.shape[1])))

    return {
        "w1": pad_w(w1, in_dim, hid_p), "b1": pad_b(b1, hid_p),
        "w2": pad_w(w2, hid_p, hid_p),  "b2": pad_b(b2, hid_p),
        "w3": pad_w(w3, hid_p, out_dim), "b3": pad_b(b3, out_dim),
    }


# --------------------------------------------------------------------------- #
# Forward                                                                      #
# --------------------------------------------------------------------------- #
def base_linear_model_forward(x, packed, *, tm=None, out_dtype=jnp.float32,
                              force_layered=False):
    """BaseLinearModel.forward (eval mode) on pre-packed params.

    x         : (batch, input_dim) float32
    packed    : output of prepare_params()
    out_dtype : jnp.float32 (matches PyTorch) or jnp.bfloat16 (halves writeback)
    """
    w1, b1 = packed["w1"], packed["b1"]
    w2, b2 = packed["w2"], packed["b2"]
    w3, b3 = packed["w3"], packed["b3"]

    batch, in_dim = x.shape
    assert in_dim == w1.shape[0], (in_dim, w1.shape)
    hid_p = w1.shape[1]
    out_dim = w3.shape[1]

    vmem_cap = _vmem_capacity_bytes()
    weight_bytes = (w1.size + w2.size + w3.size) * 2 + (b1.size + b2.size + b3.size) * 4

    # v7x fallback: resident weights would not fit VMEM -> per-layer tiled matmuls.
    if force_layered or weight_bytes > 0.7 * vmem_cap:
        h = _tiled_linear(x, w1, b1, relu=True, out_dtype=jnp.bfloat16)
        h = _tiled_linear(h, w2, b2, relu=True, out_dtype=jnp.bfloat16)
        return _tiled_linear(h, w3, b3, relu=False, out_dtype=out_dtype)

    x_isz = x.dtype.itemsize
    out_isz = jnp.dtype(out_dtype).itemsize

    # Batch tile: largest candidate whose streamed x/o tiles + f32 intermediates fit
    # next to the resident weights.  Batch itself is never rounded up to tm: the grid
    # uses cdiv and out-of-bounds rows of the partial last tile are simply dropped.
    if tm is None:
        tm = 8
        for cand in (1024, 512, 256, 128, 64, 32, 16, 8):
            stream = 2 * cand * in_dim * x_isz + 2 * cand * out_dim * out_isz
            interm = 3 * cand * hid_p * 4
            if weight_bytes + stream + interm <= 0.8 * vmem_cap:
                tm = cand
                break
    tm = max(8, min(_round_up(tm, 8), _round_up(batch, 8)))

    grid = (pl.cdiv(batch, tm),)
    x_spec = pl.BlockSpec((tm, in_dim), lambda i: (i, 0))
    o_spec = pl.BlockSpec((tm, out_dim), lambda i: (i, 0))

    stream_bytes = 2 * tm * in_dim * x_isz + 2 * tm * out_dim * out_isz
    interm_bytes = 3 * tm * hid_p * 4
    # 2x weights covers the worst case (double-buffered resident fallback strategy).
    vmem_limit = int(min(0.9 * vmem_cap,
                         max(32 * 1024 * 1024,
                             1.25 * (2 * weight_bytes + stream_bytes + interm_bytes))))

    flops = 2 * batch * (in_dim * hid_p + hid_p * hid_p + hid_p * out_dim)
    bytes_accessed = x.size * x_isz + weight_bytes + batch * out_dim * out_isz

    def run(make_resident):
        return pl.pallas_call(
            _mlp_kernel,
            out_shape=jax.ShapeDtypeStruct((batch, out_dim), out_dtype),
            grid=grid,
            in_specs=[x_spec,
                      make_resident(w1), make_resident(b1),
                      make_resident(w2), make_resident(b2),
                      make_resident(w3), make_resident(b3)],
            out_specs=o_spec,
            compiler_params=pltpu.CompilerParams(
                dimension_semantics=("parallel",),
                vmem_limit_bytes=vmem_limit),
            cost_estimate=pl.CostEstimate(flops=flops, transcendentals=0,
                                          bytes_accessed=bytes_accessed),
        )(x, w1, b1, w2, b2, w3, b3)

    # Resident-weight strategies, best first (weights DMA'd once for the whole grid):
    #   (1) whole array pinned in VMEM (truly single-buffered, no per-tile DMA),
    #   (2) constant-index block, explicitly single-buffered,
    #   (3) constant-index block, default double-buffering (previous known-good).
    strategies = (
        lambda a: pl.BlockSpec(memory_space=pltpu.MemorySpace.VMEM),
        lambda a: pl.BlockSpec(a.shape, lambda i: (0, 0), pipeline_mode=pl.Buffered(1)),
        lambda a: pl.BlockSpec(a.shape, lambda i: (0, 0)),
    )
    err = None
    for make_resident in strategies:
        try:
            return run(make_resident)
        except Exception as e:  # spec flavor unsupported on this jax/libtpu -> next
            err = e
    raise err


def init_params(key, input_dim, hidden_dim, output_dim):
    """Xavier-uniform weights stored (in, out) (= PyTorch weight.T), zero biases —
    matches BaseLinearModel._init_weights (xavier limit is symmetric in fan_in/out)."""
    def xavier(k, fan_in, fan_out):
        limit = (6.0 / (fan_in + fan_out)) ** 0.5
        return jax.random.uniform(k, (fan_in, fan_out), jnp.float32, -limit, limit)

    k1, k2, k3 = jax.random.split(key, 3)
    return {
        "w1": xavier(k1, input_dim, hidden_dim),
        "b1": jnp.zeros((1, hidden_dim), jnp.float32),
        "w2": xavier(k2, hidden_dim, hidden_dim),
        "b2": jnp.zeros((1, hidden_dim), jnp.float32),
        "w3": xavier(k3, hidden_dim, output_dim),
        "b3": jnp.zeros((1, output_dim), jnp.float32),
    }


if __name__ == "__main__":
    # Small shapes consistent with the module: x is (batch, input_dim).
    batch, input_dim, hidden_dim, output_dim = 8, 16, 32, 8

    key = jax.random.PRNGKey(0)
    k_x, k_p = jax.random.split(key)
    x = jax.random.normal(k_x, (batch, input_dim), jnp.float32)
    params = init_params(k_p, input_dim, hidden_dim, output_dim)
    packed = prepare_params(params)          # once, at init — not per forward

    # Fused (primary) path.
    y = jax.block_until_ready(base_linear_model_forward(x, packed))

    # Pure-f32 reference (same math as the PyTorch module in eval mode).  Tolerance
    # loosened for bf16 MXU operands / bf16 intermediates (f32 accumulation).
    h = jnp.maximum(x @ params["w1"] + params["b1"], 0.0)
    h = jnp.maximum(h @ params["w2"] + params["b2"], 0.0)
    y_ref = h @ params["w3"] + params["b3"]

    assert y.shape == (batch, output_dim)
    assert jnp.allclose(y, y_ref, atol=5e-2, rtol=5e-2), \
        float(jnp.max(jnp.abs(y - y_ref)))

    # Also exercise the large-hidden_dim (v7x) fallback path at the same small shapes.
    y2 = jax.block_until_ready(
        base_linear_model_forward(x, packed, force_layered=True))
    assert y2.shape == (batch, output_dim)
    assert jnp.allclose(y2, y_ref, atol=5e-2, rtol=5e-2), \
        float(jnp.max(jnp.abs(y2 - y_ref)))

    print("KERNEL_OK")
</pallas_src>

<mosaic_0001>
module attributes {stable_mosaic.version = 11 : i64} {
  func.func @_mlp_kernel(%arg0: i32, %arg1: memref<8x16xf32, #tpu.memory_space<vmem>>, %arg2: memref<16x128xbf16, #tpu.memory_space<vmem>>, %arg3: memref<1x128xf32, #tpu.memory_space<vmem>>, %arg4: memref<128x128xbf16, #tpu.memory_space<vmem>>, %arg5: memref<1x128xf32, #tpu.memory_space<vmem>>, %arg6: memref<128x8xbf16, #tpu.memory_space<vmem>>, %arg7: memref<1x8xf32, #tpu.memory_space<vmem>>, %arg8: memref<8x8xf32, #tpu.memory_space<vmem>>) attributes {dimension_semantics = [#tpu.dimension_semantics<parallel>], iteration_bounds = array<i64: 1>, scalar_prefetch = 0 : i64, scratch_operands = 0 : i64, tpu.core_type = #tpu.core_type<tc>, window_params = [{transform_indices = @transform_0, window_bounds = array<i64: 8, 16>}, {pipeline_mode = #tpu.pipeline_mode<synchronous>, transform_indices = @transform_1, window_bounds = array<i64: 16, 128>}, {pipeline_mode = #tpu.pipeline_mode<synchronous>, transform_indices = @transform_2, window_bounds = array<i64: 1, 128>}, {pipeline_mode = #tpu.pipeline_mode<synchronous>, transform_indices = @transform_3, window_bounds = array<i64: 128, 128>}, {pipeline_mode = #tpu.pipeline_mode<synchronous>, transform_indices = @transform_4, window_bounds = array<i64: 1, 128>}, {pipeline_mode = #tpu.pipeline_mode<synchronous>, transform_indices = @transform_5, window_bounds = array<i64: 128, 8>}, {pipeline_mode = #tpu.pipeline_mode<synchronous>, transform_indices = @transform_6, window_bounds = array<i64: 1, 8>}, {transform_indices = @transform_7, window_bounds = array<i64: 8, 8>}]} {
    %c0 = arith.constant 0 : index
    %c0_0 = arith.constant 0 : index
    %0 = vector.load %arg1[%c0, %c0_0] : memref<8x16xf32, #tpu.memory_space<vmem>>, vector<8x16xf32>
    %1 = arith.truncf %0 : vector<8x16xf32> to vector<8x16xbf16>
    %c0_1 = arith.constant 0 : index
    %c0_2 = arith.constant 0 : index
    %2 = vector.load %arg2[%c0_1, %c0_2] : memref<16x128xbf16, #tpu.memory_space<vmem>>, vector<16x128xbf16>
    %cst = arith.constant dense<0.000000e+00> : vector<8x128xf32>
    %3 = tpu.matmul %1, %2, %cst {dimension_numbers = #tpu.dot_dimension_numbers<[1], [0], [0], [1], [0, 0, 1, 1], [], []>} : vector<8x16xbf16>, vector<16x128xbf16>, vector<8x128xf32> -> vector<8x128xf32>
    %c0_3 = arith.constant 0 : index
    %c0_4 = arith.constant 0 : index
    %4 = vector.load %arg3[%c0_3, %c0_4] : memref<1x128xf32, #tpu.memory_space<vmem>>, vector<1x128xf32>
    %5 = vector.broadcast %4 : vector<1x128xf32> to vector<8x128xf32>
    %6 = arith.addf %3, %5 : vector<8x128xf32>
    %cst_5 = arith.constant 0.000000e+00 : f32
    %7 = vector.broadcast %cst_5 : f32 to vector<8x128xf32>
    %8 = arith.maximumf %6, %7 : vector<8x128xf32>
    %9 = arith.truncf %8 : vector<8x128xf32> to vector<8x128xbf16>
    %c0_6 = arith.constant 0 : index
    %c0_7 = arith.constant 0 : index
    %10 = vector.load %arg4[%c0_6, %c0_7] : memref<128x128xbf16, #tpu.memory_space<vmem>>, vector<128x128xbf16>
    %cst_8 = arith.constant dense<0.000000e+00> : vector<8x128xf32>
    %11 = tpu.matmul %9, %10, %cst_8 {dimension_numbers = #tpu.dot_dimension_numbers<[1], [0], [0], [1], [0, 0, 1, 1], [], []>} : vector<8x128xbf16>, vector<128x128xbf16>, vector<8x128xf32> -> vector<8x128xf32>
    %c0_9 = arith.constant 0 : index
    %c0_10 = arith.constant 0 : index
    %12 = vector.load %arg5[%c0_9, %c0_10] : memref<1x128xf32, #tpu.memory_space<vmem>>, vector<1x128xf32>
    %13 = vector.broadcast %12 : vector<1x128xf32> to vector<8x128xf32>
    %14 = arith.addf %11, %13 : vector<8x128xf32>
    %cst_11 = arith.constant 0.000000e+00 : f32
    %15 = vector.broadcast %cst_11 : f32 to vector<8x128xf32>
    %16 = arith.maximumf %14, %15 : vector<8x128xf32>
    %17 = arith.truncf %16 : vector<8x128xf32> to vector<8x128xbf16>
    %c0_12 = arith.constant 0 : index
    %c0_13 = arith.constant 0 : index
    %18 = vector.load %arg6[%c0_12, %c0_13] : memref<128x8xbf16, #tpu.memory_space<vmem>>, vector<128x8xbf16>
    %cst_14 = arith.constant dense<0.000000e+00> : vector<8x8xf32>
    %19 = tpu.matmul %17, %18, %cst_14 {dimension_numbers = #tpu.dot_dimension_numbers<[1], [0], [0], [1], [0, 0, 1, 1], [], []>} : vector<8x128xbf16>, vector<128x8xbf16>, vector<8x8xf32> -> vector<8x8xf32>
    %c0_15 = arith.constant 0 : index
    %c0_16 = arith.constant 0 : index
    %20 = vector.load %arg7[%c0_15, %c0_16] : memref<1x8xf32, #tpu.memory_space<vmem>>, vector<1x8xf32>
    %21 = vector.broadcast %20 : vector<1x8xf32> to vector<8x8xf32>
    %22 = arith.addf %19, %21 : vector<8x8xf32>
    %c0_17 = arith.constant 0 : index
    %c0_18 = arith.constant 0 : index
    %23 = vector.load %arg8[%c0_17, %c0_18] : memref<8x8xf32, #tpu.memory_space<vmem>>, vector<8x8xf32>
    tpu.vector_store %arg8[%c0_17, %c0_18], %22 {strides = array<i32>} : memref<8x8xf32, #tpu.memory_space<vmem>>, vector<8x8xf32>,
    return
  }
  func.func @transform_0(%arg0: i32) -> (i32, i32) {
    %c0_i32 = arith.constant 0 : i32
    %c0_i32_0 = arith.constant 0 : i32
    return %arg0, %c0_i32 : i32, i32
  }
  func.func @transform_1(%arg0: i32) -> (i32, i32) {
    %c0_i32 = arith.constant 0 : i32
    %c0_i32_0 = arith.constant 0 : i32
    %c0_i32_1 = arith.constant 0 : i32
    return %c0_i32, %c0_i32_0 : i32, i32
  }
  func.func @transform_2(%arg0: i32) -> (i32, i32) {
    %c0_i32 = arith.constant 0 : i32
    %c0_i32_0 = arith.constant 0 : i32
    %c0_i32_1 = arith.constant 0 : i32
    return %c0_i32, %c0_i32_0 : i32, i32
  }
  func.func @transform_3(%arg0: i32) -> (i32, i32) {
    %c0_i32 = arith.constant 0 : i32
    %c0_i32_0 = arith.constant 0 : i32
    %c0_i32_1 = arith.constant 0 : i32
    return %c0_i32, %c0_i32_0 : i32, i32
  }
  func.func @transform_4(%arg0: i32) -> (i32, i32) {
    %c0_i32 = arith.constant 0 : i32
    %c0_i32_0 = arith.constant 0 : i32
    %c0_i32_1 = arith.constant 0 : i32
    return %c0_i32, %c0_i32_0 : i32, i32
  }
  func.func @transform_5(%arg0: i32) -> (i32, i32) {
    %c0_i32 = arith.constant 0 : i32
    %c0_i32_0 = arith.constant 0 : i32
    %c0_i32_1 = arith.constant 0 : i32
    return %c0_i32, %c0_i32_0 : i32, i32
  }
  func.func @transform_6(%arg0: i32) -> (i32, i32) {
    %c0_i32 = arith.constant 0 : i32
    %c0_i32_0 = arith.constant 0 : i32
    %c0_i32_1 = arith.constant 0 : i32
    return %c0_i32, %c0_i32_0 : i32, i32
  }
  func.func @transform_7(%arg0: i32) -> (i32, i32) {
    %c0_i32 = arith.constant 0 : i32
    %c0_i32_0 = arith.constant 0 : i32
    return %arg0, %c0_i32 : i32, i32
  }
}

module attributes {stable_mosaic.version = 11 : i64} {
  func.func @_mlp_kernel(%arg0: i32, %arg1: memref<8x16xf32, #tpu.memory_space<vmem>>, %arg2: memref<16x128xbf16, #tpu.memory_space<vmem>>, %arg3: memref<1x128xf32, #tpu.memory_space<vmem>>, %arg4: memref<128x128xbf16, #tpu.memory_space<vmem>>, %arg5: memref<1x128xf32, #tpu.memory_space<vmem>>, %arg6: memref<128x8xbf16, #tpu.memory_space<vmem>>, %arg7: memref<1x8xf32, #tpu.memory_space<vmem>>, %arg8: memref<8x8xf32, #tpu.memory_space<vmem>>) attributes {dimension_semantics = [#tpu.dimension_semantics<parallel>], iteration_bounds = array<i64: 1>, scalar_prefetch = 0 : i64, scratch_operands = 0 : i64, tpu.core_type = #tpu.core_type<tc>, window_params = [{transform_indices = @transform_0, window_bounds = array<i64: 8, 16>}, {pipeline_mode = #tpu.pipeline_mode<synchronous>, transform_indices = @transform_1, window_bounds = array<i64: 16, 128>}, {pipeline_mode = #tpu.pipeline_mode<synchronous>, transform_indices = @transform_2, window_bounds = array<i64: 1, 128>}, {pipeline_mode = #tpu.pipeline_mode<synchronous>, transform_indices = @transform_3, window_bounds = array<i64: 128, 128>}, {pipeline_mode = #tpu.pipeline_mode<synchronous>, transform_indices = @transform_4, window_bounds = array<i64: 1, 128>}, {pipeline_mode = #tpu.pipeline_mode<synchronous>, transform_indices = @transform_5, window_bounds = array<i64: 128, 8>}, {pipeline_mode = #tpu.pipeline_mode<synchronous>, transform_indices = @transform_6, window_bounds = array<i64: 1, 8>}, {transform_indices = @transform_7, window_bounds = array<i64: 8, 8>}]} {
    %c0 = arith.constant 0 : index
    %c0_0 = arith.constant 0 : index
    %0 = vector.load %arg1[%c0, %c0_0] : memref<8x16xf32, #tpu.memory_space<vmem>>, vector<8x16xf32>
    %1 = arith.truncf %0 : vector<8x16xf32> to vector<8x16xbf16>
    %c0_1 = arith.constant 0 : index
    %c0_2 = arith.constant 0 : index
    %2 = vector.load %arg2[%c0_1, %c0_2] : memref<16x128xbf16, #tpu.memory_space<vmem>>, vector<16x128xbf16>
    %cst = arith.constant dense<0.000000e+00> : vector<8x128xf32>
    %3 = tpu.matmul %1, %2, %cst {dimension_numbers = #tpu.dot_dimension_numbers<[1], [0], [0], [1], [0, 0, 1, 1], [], []>} : vector<8x16xbf16>, vector<16x128xbf16>, vector<8x128xf32> -> vector<8x128xf32>
    %c0_3 = arith.constant 0 : index
    %c0_4 = arith.constant 0 : index
    %4 = vector.load %arg3[%c0_3, %c0_4] : memref<1x128xf32, #tpu.memory_space<vmem>>, vector<1x128xf32>
    %5 = vector.broadcast %4 : vector<1x128xf32> to vector<8x128xf32>
    %6 = arith.addf %3, %5 : vector<8x128xf32>
    %cst_5 = arith.constant 0.000000e+00 : f32
    %7 = vector.broadcast %cst_5 : f32 to vector<8x128xf32>
    %8 = arith.maximumf %6, %7 : vector<8x128xf32>
    %9 = arith.truncf %8 : vector<8x128xf32> to vector<8x128xbf16>
    %c0_6 = arith.constant 0 : index
    %c0_7 = arith.constant 0 : index
    %10 = vector.load %arg4[%c0_6, %c0_7] : memref<128x128xbf16, #tpu.memory_space<vmem>>, vector<128x128xbf16>
    %cst_8 = arith.constant dense<0.000000e+00> : vector<8x128xf32>
    %11 = tpu.matmul %9, %10, %cst_8 {dimension_numbers = #tpu.dot_dimension_numbers<[1], [0], [0], [1], [0, 0, 1, 1], [], []>} : vector<8x128xbf16>, vector<128x128xbf16>, vector<8x128xf32> -> vector<8x128xf32>
    %c0_9 = arith.constant 0 : index
    %c0_10 = arith.constant 0 : index
    %12 = vector.load %arg5[%c0_9, %c0_10] : memref<1x128xf32, #tpu.memory_space<vmem>>, vector<1x128xf32>
    %13 = vector.broadcast %12 : vector<1x128xf32> to vector<8x128xf32>
    %14 = arith.addf %11, %13 : vector<8x128xf32>
    %cst_11 = arith.constant 0.000000e+00 : f32
    %15 = vector.broadcast %cst_11 : f32 to vector<8x128xf32>
    %16 = arith.maximumf %14, %15 : vector<8x128xf32>
    %17 = arith.truncf %16 : vector<8x128xf32> to vector<8x128xbf16>
    %c0_12 = arith.constant 0 : index
    %c0_13 = arith.constant 0 : index
    %18 = vector.load %arg6[%c0_12, %c0_13] : memref<128x8xbf16, #tpu.memory_space<vmem>>, vector<128x8xbf16>
    %cst_14 = arith.constant dense<0.000000e+00> : vector<8x8xf32>
    %19 = tpu.matmul %17, %18, %cst_14 {dimension_numbers = #tpu.dot_dimension_numbers<[1], [0], [0], [1], [0, 0, 1, 1], [], []>} : vector<8x128xbf16>, vector<128x8xbf16>, vector<8x8xf32> -> vector<8x8xf32>
    %c0_15 = arith.constant 0 : index
    %c0_16 = arith.constant 0 : index
    %20 = vector.load %arg7[%c0_15, %c0_16] : memref<1x8xf32, #tpu.memory_space<vmem>>, vector<1x8xf32>
    %21 = vector.broadcast %20 : vector<1x8xf32> to vector<8x8xf32>
    %22 = arith.addf %19, %21 : vector<8x8xf32>
    %c0_17 = arith.constant 0 : index
    %c0_18 = arith.constant 0 : index
    %23 = vector.load %arg8[%c0_17, %c0_18] : memref<8x8xf32, #tpu.memory_space<vmem>>, vector<8x8xf32>
    tpu.vector_store %arg8[%c0_17, %c0_18], %22 {strides = array<i32>} : memref<8x8xf32, #tpu.memory_space<vmem>>, vector<8x8xf32>,
    return
  }
  func.func @transform_0(%arg0: i32) -> (i32, i32) {
    %c0_i32 = arith.constant 0 : i32
    %c0_i32_0 = arith.constant 0 : i32
    return %arg0, %c0_i32 : i32, i32
  }
  func.func @transform_1(%arg0: i32) -> (i32, i32) {
    %c0_i32 = arith.constant 0 : i32
    %c0_i32_0 = arith.constant 0 : i32
    %c0_i32_1 = arith.constant 0 : i32
    return %c0_i32, %c0_i32_0 : i32, i32
  }
  func.func @transform_2(%arg0: i32) -> (i32, i32) {
    %c0_i32 = arith.constant 0 : i32
    %c0_i32_0 = arith.constant 0 : i32
    %c0_i32_1 = arith.constant 0 : i32
    return %c0_i32, %c0_i32_0 : i32, i32
  }
  func.func @transform_3(%arg0: i32) -> (i32, i32) {
    %c0_i32 = arith.constant 0 : i32
    %c0_i32_0 = arith.constant 0 : i32
    %c0_i32_1 = arith.constant 0 : i32
    return %c0_i32, %c0_i32_0 : i32, i32
  }
  func.func @transform_4(%arg0: i32) -> (i32, i32) {
    %c0_i32 = arith.constant 0 : i32
    %c0_i32_0 = arith.constant 0 : i32
    %c0_i32_1 = arith.constant 0 : i32
    return %c0_i32, %c0_i32_0 : i32, i32
  }
  func.func @transform_5(%arg0: i32) -> (i32, i32) {
    %c0_i32 = arith.constant 0 : i32
    %c0_i32_0 = arith.constant 0 : i32
    %c0_i32_1 = arith.constant 0 : i32
    return %c0_i32, %c0_i32_0 : i32, i32
  }
  func.func @transform_6(%arg0: i32) -> (i32, i32) {
    %c0_i32 = arith.constant 0 : i32
    %c0_i32_0 = arith.constant 0 : i32
    %c0_i32_1 = arith.constant 0 : i32
    return %c0_i32, %c0_i32_0 : i32, i32
  }
  func.func @transform_7(%arg0: i32) -> (i32, i32) {
    %c0_i32 = arith.constant 0 : i32
    %c0_i32_0 = arith.constant 0 : i32
    return %arg0, %c0_i32 : i32, i32
  }
}

module attributes {stable_mosaic.version = 11 : i64} {
  func.func @_mlp_kernel(%arg0: i32, %arg1: memref<8x16xf32, #tpu.memory_space<vmem>>, %arg2: memref<16x128xbf16, #tpu.memory_space<vmem>>, %arg3: memref<1x128xf32, #tpu.memory_space<vmem>>, %arg4: memref<128x128xbf16, #tpu.memory_space<vmem>>, %arg5: memref<1x128xf32, #tpu.memory_space<vmem>>, %arg6: memref<128x8xbf16, #tpu.memory_space<vmem>>, %arg7: memref<1x8xf32, #tpu.memory_space<vmem>>, %arg8: memref<8x8xf32, #tpu.memory_space<vmem>>) attributes {dimension_semantics = [#tpu.dimension_semantics<parallel>], iteration_bounds = array<i64: 1>, scalar_prefetch = 0 : i64, scratch_operands = 0 : i64, tpu.core_type = #tpu.core_type<tc>, window_params = [{transform_indices = @transform_0, window_bounds = array<i64: 8, 16>}, {pipeline_mode = #tpu.pipeline_mode<synchronous>, transform_indices = @transform_1, window_bounds = array<i64: 16, 128>}, {pipeline_mode = #tpu.pipeline_mode<synchronous>, transform_indices = @transform_2, window_bounds = array<i64: 1, 128>}, {pipeline_mode = #tpu.pipeline_mode<synchronous>, transform_indices = @transform_3, window_bounds = array<i64: 128, 128>}, {pipeline_mode = #tpu.pipeline_mode<synchronous>, transform_indices = @transform_4, window_bounds = array<i64: 1, 128>}, {pipeline_mode = #tpu.pipeline_mode<synchronous>, transform_indices = @transform_5, window_bounds = array<i64: 128, 8>}, {pipeline_mode = #tpu.pipeline_mode<synchronous>, transform_indices = @transform_6, window_bounds = array<i64: 1, 8>}, {transform_indices = @transform_7, window_bounds = array<i64: 8, 8>}]} {
    %c0 = arith.constant 0 : index
    %c0_0 = arith.constant 0 : index
    %0 = vector.load %arg1[%c0, %c0_0] : memref<8x16xf32, #tpu.memory_space<vmem>>, vector<8x16xf32>
    %1 = arith.truncf %0 : vector<8x16xf32> to vector<8x16xbf16>
    %c0_1 = arith.constant 0 : index
    %c0_2 = arith.constant 0 : index
    %2 = vector.load %arg2[%c0_1, %c0_2] : memref<16x128xbf16, #tpu.memory_space<vmem>>, vector<16x128xbf16>
    %cst = arith.constant dense<0.000000e+00> : vector<8x128xf32>
    %3 = tpu.matmul %1, %2, %cst {dimension_numbers = #tpu.dot_dimension_numbers<[1], [0], [0], [1], [0, 0, 1, 1], [], []>} : vector<8x16xbf16>, vector<16x128xbf16>, vector<8x128xf32> -> vector<8x128xf32>
    %c0_3 = arith.constant 0 : index
    %c0_4 = arith.constant 0 : index
    %4 = vector.load %arg3[%c0_3, %c0_4] : memref<1x128xf32, #tpu.memory_space<vmem>>, vector<1x128xf32>
    %5 = vector.broadcast %4 : vector<1x128xf32> to vector<8x128xf32>
    %6 = arith.addf %3, %5 : vector<8x128xf32>
    %cst_5 = arith.constant 0.000000e+00 : f32
    %7 = vector.broadcast %cst_5 : f32 to vector<8x128xf32>
    %8 = arith.maximumf %6, %7 : vector<8x128xf32>
    %9 = arith.truncf %8 : vector<8x128xf32> to vector<8x128xbf16>
    %c0_6 = arith.constant 0 : index
    %c0_7 = arith.constant 0 : index
    %10 = vector.load %arg4[%c0_6, %c0_7] : memref<128x128xbf16, #tpu.memory_space<vmem>>, vector<128x128xbf16>
    %cst_8 = arith.constant dense<0.000000e+00> : vector<8x128xf32>
    %11 = tpu.matmul %9, %10, %cst_8 {dimension_numbers = #tpu.dot_dimension_numbers<[1], [0], [0], [1], [0, 0, 1, 1], [], []>} : vector<8x128xbf16>, vector<128x128xbf16>, vector<8x128xf32> -> vector<8x128xf32>
    %c0_9 = arith.constant 0 : index
    %c0_10 = arith.constant 0 : index
    %12 = vector.load %arg5[%c0_9, %c0_10] : memref<1x128xf32, #tpu.memory_space<vmem>>, vector<1x128xf32>
    %13 = vector.broadcast %12 : vector<1x128xf32> to vector<8x128xf32>
    %14 = arith.addf %11, %13 : vector<8x128xf32>
    %cst_11 = arith.constant 0.000000e+00 : f32
    %15 = vector.broadcast %cst_11 : f32 to vector<8x128xf32>
    %16 = arith.maximumf %14, %15 : vector<8x128xf32>
    %17 = arith.truncf %16 : vector<8x128xf32> to vector<8x128xbf16>
    %c0_12 = arith.constant 0 : index
    %c0_13 = arith.constant 0 : index
    %18 = vector.load %arg6[%c0_12, %c0_13] : memref<128x8xbf16, #tpu.memory_space<vmem>>, vector<128x8xbf16>
    %cst_14 = arith.constant dense<0.000000e+00> : vector<8x8xf32>
    %19 = tpu.matmul %17, %18, %cst_14 {dimension_numbers = #tpu.dot_dimension_numbers<[1], [0], [0], [1], [0, 0, 1, 1], [], []>} : vector<8x128xbf16>, vector<128x8xbf16>, vector<8x8xf32> -> vector<8x8xf32>
    %c0_15 = arith.constant 0 : index
    %c0_16 = arith.constant 0 : index
    %20 = vector.load %arg7[%c0_15, %c0_16] : memref<1x8xf32, #tpu.memory_space<vmem>>, vector<1x8xf32>
    %21 = vector.broadcast %20 : vector<1x8xf32> to vector<8x8xf32>
    %22 = arith.addf %19, %21 : vector<8x8xf32>
    %c0_17 = arith.constant 0 : index
    %c0_18 = arith.constant 0 : index
    %23 = vector.load %arg8[%c0_17, %c0_18] : memref<8x8xf32, #tpu.memory_space<vmem>>, vector<8x8xf32>
    tpu.vector_store %arg8[%c0_17, %c0_18], %22 {strides = array<i32>} : memref<8x8xf32, #tpu.memory_space<vmem>>, vector<8x8xf32>,
    return
  }
  func.func @transform_0(%arg0: i32) -> (i32, i32) {
    %c0_i32 = arith.constant 0 : i32
    %c0_i32_0 = arith.constant 0 : i32
    return %arg0, %c0_i32 : i32, i32
  }
  func.func @transform_1(%arg0: i32) -> (i32, i32) {
    %c0_i32 = arith.constant 0 : i32
    %c0_i32_0 = arith.constant 0 : i32
    %c0_i32_1 = arith.constant 0 : i32
    return %c0_i32, %c0_i32_0 : i32, i32
  }
  func.func @transform_2(%arg0: i32) -> (i32, i32) {
    %c0_i32 = arith.constant 0 : i32
    %c0_i32_0 = arith.constant 0 : i32
    %c0_i32_1 = arith.constant 0 : i32
    return %c0_i32, %c0_i32_0 : i32, i32
  }
  func.func @transform_3(%arg0: i32) -> (i32, i32) {
    %c0_i32 = arith.constant 0 : i32
    %c0_i32_0 = arith.constant 0 : i32
    %c0_i32_1 = arith.constant 0 : i32
    return %c0_i32, %c0_i32_0 : i32, i32
  }
  func.func @transform_4(%arg0: i32) -> (i32, i32) {
    %c0_i32 = arith.constant 0 : i32
    %c0_i32_0 = arith.constant 0 : i32
    %c0_i32_1 = arith.constant 0 : i32
    return %c0_i32, %c0_i32_0 : i32, i32
  }
  func.func @transform_5(%arg0: i32) -> (i32, i32) {
    %c0_i32 = arith.constant 0 : i32
    %c0_i32_0 = arith.constant 0 : i32
    %c0_i32_1 = arith.constant 0 : i32
    return %c0_i32, %c0_i32_0 : i32, i32
  }
  func.func @transform_6(%arg0: i32) -> (i32, i32) {
    %c0_i32 = arith.constant 0 : i32
    %c0_i32_0 = arith.constant 0 : i32
    %c0_i32_1 = arith.constant 0 : i32
    return %c0_i32, %c0_i32_0 : i32, i32
  }
  func.func @transform_7(%arg0: i32) -> (i32, i32) {
    %c0_i32 = arith.constant 0 : i32
    %c0_i32_0 = arith.constant 0 : i32
    return %arg0, %c0_i32 : i32, i32
  }
}

</mosaic_0001>

<bundles_post_ra>
// kernel: tpu_custom_call.1
= control target key start
LH: loop header
LB: loop body
LE: loop exit
PB: predicated region body
PF: predicated region fallthrough
CT: control target
= control target key end

     0   :  { %12 = vsyncpa [#allocation3], 0  ;;  %s669_s0 = inlined_call_operand.vmem [shape: f32[8,16], index: 0, kind: input, shape index: {}]   ;;  %s670_s1 = inlined_call_operand.hbm [shape: bf16[16,128], index: 1, kind: input, shape index: {}]   ;;  %s671_s2 = inlined_call_operand.vmem [shape: f32[1,128], index: 2, kind: input, shape index: {}]   ;;  %s672_s3 = inlined_call_operand.vmem [shape: bf16[128,128], index: 3, kind: input, shape index: {}]   ;;  %s673_s4 = inlined_call_operand.hbm [shape: f32[1,128], index: 4, kind: input, shape index: {}]   ;;  %s674_s5 = inlined_call_operand.vmem [shape: bf16[128,8], index: 5, kind: input, shape index: {}]   ;;  %s675_s6 = inlined_call_operand.vmem [shape: f32[1,8], index: 6, kind: input, shape index: {}]   ;;  %s676_s7 = inlined_call_operand.hbm [shape: f32[8,8], index: 7, kind: output, shape index: {}]  }
   0x1   :  { %13 = vsyncpa [#allocation6], 0 }
   0x2   :  { %14 = vsyncpa [#allocation4], 0  ;;  %s536_s24 = smov [#allocation2]  }
   0x3   :  { %s22_s25 = sshll.u32 %s536_s24, 4  ;;  %s23_s25 = int_to_ptr.vmem [resolvable:$true] %s22_s25 }
   0x4   :  { %s478_s26 = scalar_lea.vmem %s23_s25, 128  ;;  %p483_p1 = scmp.lt.s32.totalorder %s23_s25, %s23_s25 }
   0x5   :  { %p479_p0 = scmp.ne.s32.totalorder %s23_s25, %s478_s26  ;;  %p484_p2 = scmp.lt.s32.totalorder %s478_s26, %s478_s26 }
   0x7   :  { %p485_p3 = por %p484_p2, %p483_p1 }
   0x9   :  { %p486_p4 = pnand %p485_p3, %p479_p0 }
   0xb   :  { %489 = shalt.err (!%p486_p4)
}
   0xc   :  { %s537_s27 = smov 64   ;;  %s538_s28 = smov 4  }
   0xd   :  { %28 = dma.hbm_to_vmem [thread:$0]  %s670_s1, 128, %s23_s25, [#allocation3], %s537_s27, %s537_s27, %s538_s28  }
   0xe   :  { %s539_s8 = smov [#allocation5]  }
   0xf   :  { %s39_s9 = sshll.u32 %s539_s8, 4  ;;  %s40_s9 = int_to_ptr.vmem [resolvable:$true] %s39_s9 }
  0x10   :  { %s498_s10 = scalar_lea.vmem %s40_s9, 16  ;;  %s502_s11 = scalar_lea.vmem %s40_s9, 32 }
  0x11   :  { %p499_p5 = scmp.ne.s32.totalorder %s40_s9, %s498_s10  ;;  %p503_p6 = scmp.lt.s32.totalorder %s40_s9, %s40_s9 }
  0x12   :  { %p504_p7 = scmp.lt.s32.totalorder %s502_s11, %s498_s10 }
  0x14   :  { %p505_p8 = por %p504_p7, %p503_p6 }
  0x16   :  { %p506_p9 = pnand %p505_p8, %p499_p5 }
  0x18   :  { %509 = shalt.err (!%p506_p9)
}
  0x19   :  { %42 = dma.hbm_to_vmem [thread:$0]  %s673_s4, 16, %s40_s9, [#allocation6]  }
  0x1a   :  { %530 = dma.done.wait [#allocation3], 128  }
  0x1b   :  { %531 = vsyncadd [#allocation3], 4294967168 }
  0x1c   :  { %532 = dma.done.wait [#allocation6], 16  }
  0x1d   :  { %533 = vsyncadd [#allocation6], 4294967280  ;;  %v540_v0 = vmov 0.0   ;;  %vm541_vm0 = vmmov 0   ;;  %v453_v1 = vld [vmem:[#allocation2] sm:$0xff]   ;;  %vm71_vm1 = vcmask 130048  }
  0x1e   :  { %400 = vmatprep.subr.bf16.mxu0 %v540_v0  ;;  %402 = vmatprep.mubr.msk.bf16.mxu0 %vm541_vm0, %v540_v0  ;;  %v54_v2 = vld [vmem:[%s669_s0] sm:$0xff]  ;;  %v454_v4 = vld [vmem:[%s672_s3 + $0x38] sm:$0xff]   ;;  %v455_v5 = vld [vmem:[%s672_s3 + $0x30] sm:$0xff]   ;;  %s542_s21 = smov [#allocation7]   ;;  %vm341_vm2 = vcmask 64512  }
  0x1f   :  { %406 = vmatprep.subr.bf16.mxu1 %v540_v0  ;;  %422 = vmatprep.mubr.msk.bf16.mxu1 %vm541_vm0, %v540_v0  ;;  %v55_v3 = vpack.c.bf16 %v54_v2, %v54_v2  ;;  %v456_v6 = vld [vmem:[%s672_s3 + $0x28] sm:$0xff]   ;;  %v457_v7 = vld [vmem:[%s672_s3 + $0x20] sm:$0xff]   ;;  %v458_v8 = vld [vmem:[%s672_s3 + $0x18] sm:$0xff]   ;;  %s349_s22 = sshll.u32 %s542_s21, 4  ;;  %s350_s22 = int_to_ptr.vmem [resolvable:$true] %s349_s22 }
  0x20   :  { %401 = vmatpush3.bf16.msra.mxu0 %v453_v1  ;;  %407 = vmatpush3.bf16.msra.mxu1 %v454_v4  ;;  %v459_v9 = vld [vmem:[%s672_s3 + $0x10] sm:$0xff]   ;;  %v460_v10 = vld [vmem:[%s672_s3 + $0x8] sm:$0xff]   ;;  %v461_v11 = vld [vmem:[%s672_s3] sm:$0xff]   ;;  %p515_p11 = scmp.lt.s32.totalorder %s350_s22, %s350_s22 }
  0x21   :  { %426 = vmatprep.subr.bf16.mxu0 %v540_v0  ;;  %408 = vmatprep.subr.bf16.mxu1 %v540_v0  ;;  %v462_v12 = vld [vmem:[%s674_s5 + $0x38] sm:$0xff]   ;;  %v463_v13 = vld [vmem:[%s674_s5 + $0x30] sm:$0xff]   ;;  %v464_v14 = vld [vmem:[%s674_s5 + $0x28] sm:$0xff]  }
  0x22   :  { %v465_v15 = vld [vmem:[%s674_s5 + $0x20] sm:$0xff]   ;;  %v466_v16 = vld [vmem:[%s674_s5 + $0x18] sm:$0xff]   ;;  %v467_v17 = vld [vmem:[%s674_s5 + $0x10] sm:$0xff]  }
  0x23   :  { %403 = vmatmul.mubr.msk.bf16.vlgmr.msra.gmra.mxu0 %vm71_vm1, %v55_v3  ;;  %v359_v18 = vld [vmem:[%s671_s2] ss:$0 sm:$0xff]  ;;  %v468_v26 = vld [vmem:[%s674_s5 + $0x8] sm:$0xff]  }
  0x24   :  { %442 = vmatprep.mubr.msk.bf16.mxu0 %vm541_vm0, %v540_v0  ;;  %409 = vmatpush3.bf16.msra.mxu1 %v455_v5  ;;  %v469_v27 = vld [vmem:[%s674_s5] sm:$0xff]   ;;  %v362_v28 = vld [vmem:[#allocation5] ss:$0 sm:$0xff]  ;;  %s510_s5 = scalar_lea.vmem %s350_s22, 128 }
  0x25   :  { %410 = vmatprep.subr.bf16.mxu1 %v540_v0  ;;  %427 = vmatpush3.bf16.msra.mxu0 %v462_v12  ;;  %v371_v36 = vld [vmem:[%s675_s6] ss:$0 sm:$0xff]  ;;  %p511_p10 = scmp.ne.s32.totalorder %s350_s22, %s510_s5  ;;  %p516_p12 = scmp.lt.s32.totalorder %s510_s5, %s510_s5 }
  0x26   :  { %428 = vmatprep.subr.bf16.mxu0 %v540_v0 }
  0x27   :  { %p517_p13 = por %p516_p12, %p515_p11 }
  0x28   :  { %411 = vmatpush3.bf16.msra.mxu1 %v456_v6 }
  0x29   :  { %412 = vmatprep.subr.bf16.mxu1 %v540_v0  ;;  %429 = vmatpush3.bf16.msra.mxu0 %v463_v13  ;;  %p518_p0 = pnand %p517_p13, %p511_p10 }
  0x2a   :  { %430 = vmatprep.subr.bf16.mxu0 %v540_v0 }
  0x2c   :  { %413 = vmatpush3.bf16.msra.mxu1 %v457_v7 }
  0x2d   :  { %414 = vmatprep.subr.bf16.mxu1 %v540_v0  ;;  %431 = vmatpush3.bf16.msra.mxu0 %v464_v14 }
  0x2e   :  { %432 = vmatprep.subr.bf16.mxu0 %v540_v0 }
  0x30   :  { %415 = vmatpush3.bf16.msra.mxu1 %v458_v8 }
  0x31   :  { %416 = vmatprep.subr.bf16.mxu1 %v540_v0  ;;  %433 = vmatpush3.bf16.msra.mxu0 %v465_v15 }
  0x32   :  { %434 = vmatprep.subr.bf16.mxu0 %v540_v0 }
  0x34   :  { %417 = vmatpush3.bf16.msra.mxu1 %v459_v9 }
  0x35   :  { %418 = vmatprep.subr.bf16.mxu1 %v540_v0  ;;  %435 = vmatpush3.bf16.msra.mxu0 %v466_v16 }
  0x36   :  { %436 = vmatprep.subr.bf16.mxu0 %v540_v0 }
  0x38   :  { %419 = vmatpush3.bf16.msra.mxu1 %v460_v10 }
  0x39   :  { %420 = vmatprep.subr.bf16.mxu1 %v540_v0  ;;  %437 = vmatpush3.bf16.msra.mxu0 %v467_v17 }
  0x3a   :  { %438 = vmatprep.subr.bf16.mxu0 %v540_v0 }
  0x3c   :  { %421 = vmatpush3.bf16.msra.mxu1 %v461_v11 }
  0x3d   :  { %439 = vmatpush3.bf16.msra.mxu0 %v468_v26 }
  0x3e   :  { %440 = vmatprep.subr.bf16.mxu0 %v540_v0 }
  0x41   :  { %441 = vmatpush3.bf16.msra.mxu0 %v469_v27 }
  0xe3   :  { %v109_v19 = vpop.f32.mrf.mxu0 }
  0xe4   :  { %v110_v20 = vadd.f32 %v359_v18, %v109_v19 }
  0xe5   :  { %v404_v21 = vpop.f32.mrf.mxu0 }
  0xe6   :  { %v115_v22 = vmax.f32 %v110_v20, 0.0 }
  0xe7   :  { %v112_v23 = vpop.f32.mrf.mxu0 }
  0xe8   :  { %v116_v24 = vpack.c.bf16 %v115_v22, %v115_v22 }
  0xe9   :  { %v405_v25 = vpop.f32.mrf.mxu0 }
  0xea   :  { %423 = vmatmul.mubr.bf16.vlgmr.msra.gmra.mxu1 %v116_v24 }
 0x1aa   :  { %v222_v29 = vpop.f32.mrf.mxu1 }
 0x1ab   :  { %v223_v30 = vadd.f32 %v362_v28, %v222_v29 }
 0x1ac   :  { %v424_v31 = vpop.f32.mrf.mxu1 }
 0x1ad   :  { %v228_v32 = vmax.f32 %v223_v30, 0.0 }
 0x1ae   :  { %v225_v33 = vpop.f32.mrf.mxu1 }
 0x1af   :  { %v229_v34 = vpack.c.bf16 %v228_v32, %v228_v32 }
 0x1b0   :  { %v425_v35 = vpop.f32.mrf.mxu1 }
 0x1b1   :  { %443 = vmatmul.mubr.bf16.vlgmr.msra.gmra.mxu0 %v229_v34 }
 0x271   :  { %v335_v37 = vpop.f32.mrf.mxu0 }
 0x272   :  { %v336_v38 = vadd.f32 %v371_v36, %v335_v37 }
 0x273   :  { %v444_v39 = vpop.f32.mrf.mxu0 }
 0x274   :  { %342 = vst.msk [vmem:[#allocation7] sm:$0xff] %vm341_vm2, %v336_v38 }
 0x275   :  { %v338_v40 = vpop.f32.mrf.mxu0 }
 0x276   :  { %521 = shalt.err (!%p518_p0)
}
 0x277   :  { %352 = dma.vmem_to_hbm [thread:$0]  %s350_s22, 128, %s676_s7, [#allocation4]   ;;  %v445_v41 = vpop.f32.mrf.mxu0 }
 0x278   :  { %534 = dma.done.wait [#allocation4], 128  }
 0x279   :  { %535 = vsyncadd [#allocation4], 4294967168 }
 0x27a   :  { %356 = vsyncpa [#allocation3], 1 }
 0x27b   :  { %357 = vsyncpa [#allocation6], 1 }
 0x27c   :  { %358 = vsyncpa [#allocation4], 1 }

// kernel: tpu_custom_call.1
= control target key start
LH: loop header
LB: loop body
LE: loop exit
PB: predicated region body
PF: predicated region fallthrough
CT: control target
= control target key end

     0   :  { %12 = vsyncpa [#allocation3], 0  ;;  %s669_s0 = inlined_call_operand.vmem [shape: f32[8,16], index: 0, kind: input, shape index: {}]   ;;  %s670_s1 = inlined_call_operand.hbm [shape: bf16[16,128], index: 1, kind: input, shape index: {}]   ;;  %s671_s2 = inlined_call_operand.vmem [shape: f32[1,128], index: 2, kind: input, shape index: {}]   ;;  %s672_s3 = inlined_call_operand.vmem [shape: bf16[128,128], index: 3, kind: input, shape index: {}]   ;;  %s673_s4 = inlined_call_operand.hbm [shape: f32[1,128], index: 4, kind: input, shape index: {}]   ;;  %s674_s5 = inlined_call_operand.vmem [shape: bf16[128,8], index: 5, kind: input, shape index: {}]   ;;  %s675_s6 = inlined_call_operand.vmem [shape: f32[1,8], index: 6, kind: input, shape index: {}]   ;;  %s676_s7 = inlined_call_operand.hbm [shape: f32[8,8], index: 7, kind: output, shape index: {}]  }
   0x1   :  { %13 = vsyncpa [#allocation6], 0 }
   0x2   :  { %14 = vsyncpa [#allocation4], 0  ;;  %s536_s24 = smov [#allocation2]  }
   0x3   :  { %s22_s25 = sshll.u32 %s536_s24, 4  ;;  %s23_s25 = int_to_ptr.vmem [resolvable:$true] %s22_s25 }
   0x4   :  { %s478_s26 = scalar_lea.vmem %s23_s25, 128  ;;  %p483_p1 = scmp.lt.s32.totalorder %s23_s25, %s23_s25 }
   0x5   :  { %p479_p0 = scmp.ne.s32.totalorder %s23_s25, %s478_s26  ;;  %p484_p2 = scmp.lt.s32.totalorder %s478_s26, %s478_s26 }
   0x7   :  { %p485_p3 = por %p484_p2, %p483_p1 }
   0x9   :  { %p486_p4 = pnand %p485_p3, %p479_p0 }
   0xb   :  { %489 = shalt.err (!%p486_p4)
}
   0xc   :  { %s537_s27 = smov 64   ;;  %s538_s28 = smov 4  }
   0xd   :  { %28 = dma.hbm_to_vmem [thread:$0]  %s670_s1, 128, %s23_s25, [#allocation3], %s537_s27, %s537_s27, %s538_s28  }
   0xe   :  { %s539_s8 = smov [#allocation5]  }
   0xf   :  { %s39_s9 = sshll.u32 %s539_s8, 4  ;;  %s40_s9 = int_to_ptr.vmem [resolvable:$true] %s39_s9 }
  0x10   :  { %s498_s10 = scalar_lea.vmem %s40_s9, 16  ;;  %s502_s11 = scalar_lea.vmem %s40_s9, 32 }
  0x11   :  { %p499_p5 = scmp.ne.s32.totalorder %s40_s9, %s498_s10  ;;  %p503_p6 = scmp.lt.s32.totalorder %s40_s9, %s40_s9 }
  0x12   :  { %p504_p7 = scmp.lt.s32.totalorder %s502_s11, %s498_s10 }
  0x14   :  { %p505_p8 = por %p504_p7, %p503_p6 }
  0x16   :  { %p506_p9 = pnand %p505_p8, %p499_p5 }
  0x18   :  { %509 = shalt.err (!%p506_p9)
}
  0x19   :  { %42 = dma.hbm_to_vmem [thread:$0]  %s673_s4, 16, %s40_s9, [#allocation6]  }
  0x1a   :  { %530 = dma.done.wait [#allocation3], 128  }
  0x1b   :  { %531 = vsyncadd [#allocation3], 4294967168 }
  0x1c   :  { %532 = dma.done.wait [#allocation6], 16  }
  0x1d   :  { %533 = vsyncadd [#allocation6], 4294967280  ;;  %v540_v0 = vmov 0.0   ;;  %vm541_vm0 = vmmov 0   ;;  %v453_v1 = vld [vmem:[#allocation2] sm:$0xff]   ;;  %vm71_vm1 = vcmask 130048  }
  0x1e   :  { %400 = vmatprep.subr.bf16.mxu0 %v540_v0  ;;  %402 = vmatprep.mubr.msk.bf16.mxu0 %vm541_vm0, %v540_v0  ;;  %v54_v2 = vld [vmem:[%s669_s0] sm:$0xff]  ;;  %v454_v4 = vld [vmem:[%s672_s3 + $0x38] sm:$0xff]   ;;  %v455_v5 = vld [vmem:[%s672_s3 + $0x30] sm:$0xff]   ;;  %s542_s21 = smov [#allocation7]   ;;  %vm341_vm2 = vcmask 64512  }
  0x1f   :  { %406 = vmatprep.subr.bf16.mxu1 %v540_v0  ;;  %422 = vmatprep.mubr.msk.bf16.mxu1 %vm541_vm0, %v540_v0  ;;  %v55_v3 = vpack.c.bf16 %v54_v2, %v54_v2  ;;  %v456_v6 = vld [vmem:[%s672_s3 + $0x28] sm:$0xff]   ;;  %v457_v7 = vld [vmem:[%s672_s3 + $0x20] sm:$0xff]   ;;  %v458_v8 = vld [vmem:[%s672_s3 + $0x18] sm:$0xff]   ;;  %s349_s22 = sshll.u32 %s542_s21, 4  ;;  %s350_s22 = int_to_ptr.vmem [resolvable:$true] %s349_s22 }
  0x20   :  { %401 = vmatpush3.bf16.msra.mxu0 %v453_v1  ;;  %407 = vmatpush3.bf16.msra.mxu1 %v454_v4  ;;  %v459_v9 = vld [vmem:[%s672_s3 + $0x10] sm:$0xff]   ;;  %v460_v10 = vld [vmem:[%s672_s3 + $0x8] sm:$0xff]   ;;  %v461_v11 = vld [vmem:[%s672_s3] sm:$0xff]   ;;  %p515_p11 = scmp.lt.s32.totalorder %s350_s22, %s350_s22 }
  0x21   :  { %426 = vmatprep.subr.bf16.mxu0 %v540_v0  ;;  %408 = vmatprep.subr.bf16.mxu1 %v540_v0  ;;  %v462_v12 = vld [vmem:[%s674_s5 + $0x38] sm:$0xff]   ;;  %v463_v13 = vld [vmem:[%s674_s5 + $0x30] sm:$0xff]   ;;  %v464_v14 = vld [vmem:[%s674_s5 + $0x28] sm:$0xff]  }
  0x22   :  { %v465_v15 = vld [vmem:[%s674_s5 + $0x20] sm:$0xff]   ;;  %v466_v16 = vld [vmem:[%s674_s5 + $0x18] sm:$0xff]   ;;  %v467_v17 = vld [vmem:[%s674_s5 + $0x10] sm:$0xff]  }
  0x23   :  { %403 = vmatmul.mubr.msk.bf16.vlgmr.msra.gmra.mxu0 %vm71_vm1, %v55_v3  ;;  %v359_v18 = vld [vmem:[%s671_s2] ss:$0 sm:$0xff]  ;;  %v468_v26 = vld [vmem:[%s674_s5 + $0x8] sm:$0xff]  }
  0x24   :  { %442 = vmatprep.mubr.msk.bf16.mxu0 %vm541_vm0, %v540_v0  ;;  %409 = vmatpush3.bf16.msra.mxu1 %v455_v5  ;;  %v469_v27 = vld [vmem:[%s674_s5] sm:$0xff]   ;;  %v362_v28 = vld [vmem:[#allocation5] ss:$0 sm:$0xff]  ;;  %s510_s5 = scalar_lea.vmem %s350_s22, 128 }
  0x25   :  { %410 = vmatprep.subr.bf16.mxu1 %v540_v0  ;;  %427 = vmatpush3.bf16.msra.mxu0 %v462_v12  ;;  %v371_v36 = vld [vmem:[%s675_s6] ss:$0 sm:$0xff]  ;;  %p511_p10 = scmp.ne.s32.totalorder %s350_s22, %s510_s5  ;;  %p516_p12 = scmp.lt.s32.totalorder %s510_s5, %s510_s5 }
  0x26   :  { %428 = vmatprep.subr.bf16.mxu0 %v540_v0 }
  0x27   :  { %p517_p13 = por %p516_p12, %p515_p11 }
  0x28   :  { %411 = vmatpush3.bf16.msra.mxu1 %v456_v6 }
  0x29   :  { %412 = vmatprep.subr.bf16.mxu1 %v540_v0  ;;  %429 = vmatpush3.bf16.msra.mxu0 %v463_v13  ;;  %p518_p0 = pnand %p517_p13, %p511_p10 }
  0x2a   :  { %430 = vmatprep.subr.bf16.mxu0 %v540_v0 }
  0x2c   :  { %413 = vmatpush3.bf16.msra.mxu1 %v457_v7 }
  0x2d   :  { %414 = vmatprep.subr.bf16.mxu1 %v540_v0  ;;  %431 = vmatpush3.bf16.msra.mxu0 %v464_v14 }
  0x2e   :  { %432 = vmatprep.subr.bf16.mxu0 %v540_v0 }
  0x30   :  { %415 = vmatpush3.bf16.msra.mxu1 %v458_v8 }
  0x31   :  { %416 = vmatprep.subr.bf16.mxu1 %v540_v0  ;;  %433 = vmatpush3.bf16.msra.mxu0 %v465_v15 }
  0x32   :  { %434 = vmatprep.subr.bf16.mxu0 %v540_v0 }
  0x34   :  { %417 = vmatpush3.bf16.msra.mxu1 %v459_v9 }
  0x35   :  { %418 = vmatprep.subr.bf16.mxu1 %v540_v0  ;;  %435 = vmatpush3.bf16.msra.mxu0 %v466_v16 }
  0x36   :  { %436 = vmatprep.subr.bf16.mxu0 %v540_v0 }
  0x38   :  { %419 = vmatpush3.bf16.msra.mxu1 %v460_v10 }
  0x39   :  { %420 = vmatprep.subr.bf16.mxu1 %v540_v0  ;;  %437 = vmatpush3.bf16.msra.mxu0 %v467_v17 }
  0x3a   :  { %438 = vmatprep.subr.bf16.mxu0 %v540_v0 }
  0x3c   :  { %421 = vmatpush3.bf16.msra.mxu1 %v461_v11 }
  0x3d   :  { %439 = vmatpush3.bf16.msra.mxu0 %v468_v26 }
  0x3e   :  { %440 = vmatprep.subr.bf16.mxu0 %v540_v0 }
  0x41   :  { %441 = vmatpush3.bf16.msra.mxu0 %v469_v27 }
  0xe3   :  { %v109_v19 = vpop.f32.mrf.mxu0 }
  0xe4   :  { %v110_v20 = vadd.f32 %v359_v18, %v109_v19 }
  0xe5   :  { %v404_v21 = vpop.f32.mrf.mxu0 }
  0xe6   :  { %v115_v22 = vmax.f32 %v110_v20, 0.0 }
  0xe7   :  { %v112_v23 = vpop.f32.mrf.mxu0 }
  0xe8   :  { %v116_v24 = vpack.c.bf16 %v115_v22, %v115_v22 }
  0xe9   :  { %v405_v25 = vpop.f32.mrf.mxu0 }
  0xea   :  { %423 = vmatmul.mubr.bf16.vlgmr.msra.gmra.mxu1 %v116_v24 }
 0x1aa   :  { %v222_v29 = vpop.f32.mrf.mxu1 }
 0x1ab   :  { %v223_v30 = vadd.f32 %v362_v28, %v222_v29 }
 0x1ac   :  { %v424_v31 = vpop.f32.mrf.mxu1 }
 0x1ad   :  { %v228_v32 = vmax.f32 %v223_v30, 0.0 }
 0x1ae   :  { %v225_v33 = vpop.f32.mrf.mxu1 }
 0x1af   :  { %v229_v34 = vpack.c.bf16 %v228_v32, %v228_v32 }
 0x1b0   :  { %v425_v35 = vpop.f32.mrf.mxu1 }
 0x1b1   :  { %443 = vmatmul.mubr.bf16.vlgmr.msra.gmra.mxu0 %v229_v34 }
 0x271   :  { %v335_v37 = vpop.f32.mrf.mxu0 }
 0x272   :  { %v336_v38 = vadd.f32 %v371_v36, %v335_v37 }
 0x273   :  { %v444_v39 = vpop.f32.mrf.mxu0 }
 0x274   :  { %342 = vst.msk [vmem:[#allocation7] sm:$0xff] %vm341_vm2, %v336_v38 }
 0x275   :  { %v338_v40 = vpop.f32.mrf.mxu0 }
 0x276   :  { %521 = shalt.err (!%p518_p0)
}
 0x277   :  { %352 = dma.vmem_to_hbm [thread:$0]  %s350_s22, 128, %s676_s7, [#allocation4]   ;;  %v445_v41 = vpop.f32.mrf.mxu0 }
 0x278   :  { %534 = dma.done.wait [#allocation4], 128  }
 0x279   :  { %535 = vsyncadd [#allocation4], 4294967168 }
 0x27a   :  { %356 = vsyncpa [#allocation3], 1 }
 0x27b   :  { %357 = vsyncpa [#allocation6], 1 }
 0x27c   :  { %358 = vsyncpa [#allocation4], 1 }

// kernel: tpu_custom_call.1
= control target key start
LH: loop header
LB: loop body
LE: loop exit
PB: predicated region body
PF: predicated region fallthrough
CT: control target
= control target key end

     0   :  { %12 = vsyncpa [#allocation3], 0  ;;  %s669_s0 = inlined_call_operand.vmem [shape: f32[8,16], index: 0, kind: input, shape index: {}]   ;;  %s670_s1 = inlined_call_operand.hbm [shape: bf16[16,128], index: 1, kind: input, shape index: {}]   ;;  %s671_s2 = inlined_call_operand.vmem [shape: f32[1,128], index: 2, kind: input, shape index: {}]   ;;  %s672_s3 = inlined_call_operand.vmem [shape: bf16[128,128], index: 3, kind: input, shape index: {}]   ;;  %s673_s4 = inlined_call_operand.hbm [shape: f32[1,128], index: 4, kind: input, shape index: {}]   ;;  %s674_s5 = inlined_call_operand.vmem [shape: bf16[128,8], index: 5, kind: input, shape index: {}]   ;;  %s675_s6 = inlined_call_operand.vmem [shape: f32[1,8], index: 6, kind: input, shape index: {}]   ;;  %s676_s7 = inlined_call_operand.hbm [shape: f32[8,8], index: 7, kind: output, shape index: {}]  }
   0x1   :  { %13 = vsyncpa [#allocation6], 0 }
   0x2   :  { %14 = vsyncpa [#allocation4], 0  ;;  %s536_s24 = smov [#allocation2]  }
   0x3   :  { %s22_s25 = sshll.u32 %s536_s24, 4  ;;  %s23_s25 = int_to_ptr.vmem [resolvable:$true] %s22_s25 }
   0x4   :  { %s478_s26 = scalar_lea.vmem %s23_s25, 128  ;;  %p483_p1 = scmp.lt.s32.totalorder %s23_s25, %s23_s25 }
   0x5   :  { %p479_p0 = scmp.ne.s32.totalorder %s23_s25, %s478_s26  ;;  %p484_p2 = scmp.lt.s32.totalorder %s478_s26, %s478_s26 }
   0x7   :  { %p485_p3 = por %p484_p2, %p483_p1 }
   0x9   :  { %p486_p4 = pnand %p485_p3, %p479_p0 }
   0xb   :  { %489 = shalt.err (!%p486_p4)
}
   0xc   :  { %s537_s27 = smov 64   ;;  %s538_s28 = smov 4  }
   0xd   :  { %28 = dma.hbm_to_vmem [thread:$0]  %s670_s1, 128, %s23_s25, [#allocation3], %s537_s27, %s537_s27, %s538_s28  }
   0xe   :  { %s539_s8 = smov [#allocation5]  }
   0xf   :  { %s39_s9 = sshll.u32 %s539_s8, 4  ;;  %s40_s9 = int_to_ptr.vmem [resolvable:$true] %s39_s9 }
  0x10   :  { %s498_s10 = scalar_lea.vmem %s40_s9, 16  ;;  %s502_s11 = scalar_lea.vmem %s40_s9, 32 }
  0x11   :  { %p499_p5 = scmp.ne.s32.totalorder %s40_s9, %s498_s10  ;;  %p503_p6 = scmp.lt.s32.totalorder %s40_s9, %s40_s9 }
  0x12   :  { %p504_p7 = scmp.lt.s32.totalorder %s502_s11, %s498_s10 }
  0x14   :  { %p505_p8 = por %p504_p7, %p503_p6 }
  0x16   :  { %p506_p9 = pnand %p505_p8, %p499_p5 }
  0x18   :  { %509 = shalt.err (!%p506_p9)
}
  0x19   :  { %42 = dma.hbm_to_vmem [thread:$0]  %s673_s4, 16, %s40_s9, [#allocation6]  }
  0x1a   :  { %530 = dma.done.wait [#allocation3], 128  }
  0x1b   :  { %531 = vsyncadd [#allocation3], 4294967168 }
  0x1c   :  { %532 = dma.done.wait [#allocation6], 16  }
  0x1d   :  { %533 = vsyncadd [#allocation6], 4294967280  ;;  %v540_v0 = vmov 0.0   ;;  %vm541_vm0 = vmmov 0   ;;  %v453_v1 = vld [vmem:[#allocation2] sm:$0xff]   ;;  %vm71_vm1 = vcmask 130048  }
  0x1e   :  { %400 = vmatprep.subr.bf16.mxu0 %v540_v0  ;;  %402 = vmatprep.mubr.msk.bf16.mxu0 %vm541_vm0, %v540_v0  ;;  %v54_v2 = vld [vmem:[%s669_s0] sm:$0xff]  ;;  %v454_v4 = vld [vmem:[%s672_s3 + $0x38] sm:$0xff]   ;;  %v455_v5 = vld [vmem:[%s672_s3 + $0x30] sm:$0xff]   ;;  %s542_s21 = smov [#allocation7]   ;;  %vm341_vm2 = vcmask 64512  }
  0x1f   :  { %406 = vmatprep.subr.bf16.mxu1 %v540_v0  ;;  %422 = vmatprep.mubr.msk.bf16.mxu1 %vm541_vm0, %v540_v0  ;;  %v55_v3 = vpack.c.bf16 %v54_v2, %v54_v2  ;;  %v456_v6 = vld [vmem:[%s672_s3 + $0x28] sm:$0xff]   ;;  %v457_v7 = vld [vmem:[%s672_s3 + $0x20] sm:$0xff]   ;;  %v458_v8 = vld [vmem:[%s672_s3 + $0x18] sm:$0xff]   ;;  %s349_s22 = sshll.u32 %s542_s21, 4  ;;  %s350_s22 = int_to_ptr.vmem [resolvable:$true] %s349_s22 }
  0x20   :  { %401 = vmatpush3.bf16.msra.mxu0 %v453_v1  ;;  %407 = vmatpush3.bf16.msra.mxu1 %v454_v4  ;;  %v459_v9 = vld [vmem:[%s672_s3 + $0x10] sm:$0xff]   ;;  %v460_v10 = vld [vmem:[%s672_s3 + $0x8] sm:$0xff]   ;;  %v461_v11 = vld [vmem:[%s672_s3] sm:$0xff]   ;;  %p515_p11 = scmp.lt.s32.totalorder %s350_s22, %s350_s22 }
  0x21   :  { %426 = vmatprep.subr.bf16.mxu0 %v540_v0  ;;  %408 = vmatprep.subr.bf16.mxu1 %v540_v0  ;;  %v462_v12 = vld [vmem:[%s674_s5 + $0x38] sm:$0xff]   ;;  %v463_v13 = vld [vmem:[%s674_s5 + $0x30] sm:$0xff]   ;;  %v464_v14 = vld [vmem:[%s674_s5 + $0x28] sm:$0xff]  }
  0x22   :  { %v465_v15 = vld [vmem:[%s674_s5 + $0x20] sm:$0xff]   ;;  %v466_v16 = vld [vmem:[%s674_s5 + $0x18] sm:$0xff]   ;;  %v467_v17 = vld [vmem:[%s674_s5 + $0x10] sm:$0xff]  }
  0x23   :  { %403 = vmatmul.mubr.msk.bf16.vlgmr.msra.gmra.mxu0 %vm71_vm1, %v55_v3  ;;  %v359_v18 = vld [vmem:[%s671_s2] ss:$0 sm:$0xff]  ;;  %v468_v26 = vld [vmem:[%s674_s5 + $0x8] sm:$0xff]  }
  0x24   :  { %442 = vmatprep.mubr.msk.bf16.mxu0 %vm541_vm0, %v540_v0  ;;  %409 = vmatpush3.bf16.msra.mxu1 %v455_v5  ;;  %v469_v27 = vld [vmem:[%s674_s5] sm:$0xff]   ;;  %v362_v28 = vld [vmem:[#allocation5] ss:$0 sm:$0xff]  ;;  %s510_s5 = scalar_lea.vmem %s350_s22, 128 }
  0x25   :  { %410 = vmatprep.subr.bf16.mxu1 %v540_v0  ;;  %427 = vmatpush3.bf16.msra.mxu0 %v462_v12  ;;  %v371_v36 = vld [vmem:[%s675_s6] ss:$0 sm:$0xff]  ;;  %p511_p10 = scmp.ne.s32.totalorder %s350_s22, %s510_s5  ;;  %p516_p12 = scmp.lt.s32.totalorder %s510_s5, %s510_s5 }
  0x26   :  { %428 = vmatprep.subr.bf16.mxu0 %v540_v0 }
  0x27   :  { %p517_p13 = por %p516_p12, %p515_p11 }
  0x28   :  { %411 = vmatpush3.bf16.msra.mxu1 %v456_v6 }
  0x29   :  { %412 = vmatprep.subr.bf16.mxu1 %v540_v0  ;;  %429 = vmatpush3.bf16.msra.mxu0 %v463_v13  ;;  %p518_p0 = pnand %p517_p13, %p511_p10 }
  0x2a   :  { %430 = vmatprep.subr.bf16.mxu0 %v540_v0 }
  0x2c   :  { %413 = vmatpush3.bf16.msra.mxu1 %v457_v7 }
  0x2d   :  { %414 = vmatprep.subr.bf16.mxu1 %v540_v0  ;;  %431 = vmatpush3.bf16.msra.mxu0 %v464_v14 }
  0x2e   :  { %432 = vmatprep.subr.bf16.mxu0 %v540_v0 }
  0x30   :  { %415 = vmatpush3.bf16.msra.mxu1 %v458_v8 }
  0x31   :  { %416 = vmatprep.subr.bf16.mxu1 %v540_v0  ;;  %433 = vmatpush3.bf16.msra.mxu0 %v465_v15 }
  0x32   :  { %434 = vmatprep.subr.bf16.mxu0 %v540_v0 }
  0x34   :  { %417 = vmatpush3.bf16.msra.mxu1 %v459_v9 }
  0x35   :  { %418 = vmatprep.subr.bf16.mxu1 %v540_v0  ;;  %435 = vmatpush3.bf16.msra.mxu0 %v466_v16 }
  0x36   :  { %436 = vmatprep.subr.bf16.mxu0 %v540_v0 }
  0x38   :  { %419 = vmatpush3.bf16.msra.mxu1 %v460_v10 }
  0x39   :  { %420 = vmatprep.subr.bf16.mxu1 %v540_v0  ;;  %437 = vmatpush3.bf16.msra.mxu0 %v467_v17 }
  0x3a   :  { %438 = vmatprep.subr.bf16.mxu0 %v540_v0 }
  0x3c   :  { %421 = vmatpush3.bf16.msra.mxu1 %v461_v11 }
  0x3d   :  { %439 = vmatpush3.bf16.msra.mxu0 %v468_v26 }
  0x3e   :  { %440 = vmatprep.subr.bf16.mxu0 %v540_v0 }
  0x41   :  { %441 = vmatpush3.bf16.msra.mxu0 %v469_v27 }
  0xe3   :  { %v109_v19 = vpop.f32.mrf.mxu0 }
  0xe4   :  { %v110_v20 = vadd.f32 %v359_v18, %v109_v19 }
  0xe5   :  { %v404_v21 = vpop.f32.mrf.mxu0 }
  0xe6   :  { %v115_v22 = vmax.f32 %v110_v20, 0.0 }
  0xe7   :  { %v112_v23 = vpop.f32.mrf.mxu0 }
  0xe8   :  { %v116_v24 = vpack.c.bf16 %v115_v22, %v115_v22 }
  0xe9   :  { %v405_v25 = vpop.f32.mrf.mxu0 }
  0xea   :  { %423 = vmatmul.mubr.bf16.vlgmr.msra.gmra.mxu1 %v116_v24 }
 0x1aa   :  { %v222_v29 = vpop.f32.mrf.mxu1 }
 0x1ab   :  { %v223_v30 = vadd.f32 %v362_v28, %v222_v29 }
 0x1ac   :  { %v424_v31 = vpop.f32.mrf.mxu1 }
 0x1ad   :  { %v228_v32 = vmax.f32 %v223_v30, 0.0 }
 0x1ae   :  { %v225_v33 = vpop.f32.mrf.mxu1 }
 0x1af   :  { %v229_v34 = vpack.c.bf16 %v228_v32, %v228_v32 }
 0x1b0   :  { %v425_v35 = vpop.f32.mrf.mxu1 }
 0x1b1   :  { %443 = vmatmul.mubr.bf16.vlgmr.msra.gmra.mxu0 %v229_v34 }
 0x271   :  { %v335_v37 = vpop.f32.mrf.mxu0 }
 0x272   :  { %v336_v38 = vadd.f32 %v371_v36, %v335_v37 }
 0x273   :  { %v444_v39 = vpop.f32.mrf.mxu0 }
 0x274   :  { %342 = vst.msk [vmem:[#allocation7] sm:$0xff] %vm341_vm2, %v336_v38 }
 0x275   :  { %v338_v40 = vpop.f32.mrf.mxu0 }
 0x276   :  { %521 = shalt.err (!%p518_p0)
}
 0x277   :  { %352 = dma.vmem_to_hbm [thread:$0]  %s350_s22, 128, %s676_s7, [#allocation4]   ;;  %v445_v41 = vpop.f32.mrf.mxu0 }
 0x278   :  { %534 = dma.done.wait [#allocation4], 128  }
 0x279   :  { %535 = vsyncadd [#allocation4], 4294967168 }
 0x27a   :  { %356 = vsyncpa [#allocation3], 1 }
 0x27b   :  { %357 = vsyncpa [#allocation6], 1 }
 0x27c   :  { %358 = vsyncpa [#allocation4], 1 }

</bundles_post_ra>
